<compile_context>
chip_gen: v6e
topology: v6e:2x2x1
jax: 0.10.0
libtpu: 0.0.40
codegen_flags: <defaults>
</compile_context>

<pallas_src>
import functools
import math

import jax
import jax.numpy as jnp
from jax.experimental import pallas as pl
from jax.experimental.pallas import tpu as pltpu

_LANES = 128
_TARGET_BLOCK_BYTES = 4 * 1024 * 1024  # 2 in-bufs + 2 out-bufs -> 16 MiB VMEM


def _copy_kernel(x_ref, o_ref):
    # Pure data movement: copy the current (block_rows, 128) VMEM block.
    o_ref[...] = x_ref[...]


@functools.partial(jax.jit, donate_argnums=0)
def _flatten_pallas(x2d: jax.Array) -> jax.Array:
    """Single lane/sublane-dense HBM pass over an already-flat (N, D) array."""
    n, d = x2d.shape
    total = n * d
    itemsize = jnp.dtype(x2d.dtype).itemsize
    # Sublane granularity: 8 for 32-bit, 16 for bf16, 32 for int8/fp8.
    sub = max(8, 32 // itemsize)

    # Row block sized to ~_TARGET_BLOCK_BYTES (multiple of `sub`).
    target_rows = max(sub, (_TARGET_BLOCK_BYTES // (_LANES * itemsize)) // sub * sub)
    rows_needed = -(-total // _LANES)
    # Prefer >=2 grid steps (v7x has 2 TensorCores) when there is enough data.
    half_rows = (rows_needed // 2) // sub * sub
    block_rows = min(target_rows, half_rows) if half_rows >= sub else sub

    # Pad the flat buffer up to a whole number of blocks: keeps every store
    # lane/sublane dense (no masked vst) and the VMEM footprint predictable.
    block_elems = block_rows * _LANES
    padded_total = -(-total // block_elems) * block_elems
    flat = jnp.reshape(x2d, (total,))
    if padded_total != total:
        flat = jnp.pad(flat, (0, padded_total - total))
    rows = padded_total // _LANES
    slab = jnp.reshape(flat, (rows, _LANES))

    grid = (rows // block_rows,)
    out_slab = pl.pallas_call(
        _copy_kernel,
        out_shape=jax.ShapeDtypeStruct((rows, _LANES), x2d.dtype),
        grid_spec=pltpu.PrefetchScalarGridSpec(
            num_scalar_prefetch=0,
            grid=grid,
            in_specs=[pl.BlockSpec((block_rows, _LANES), lambda i: (i, 0))],
            out_specs=pl.BlockSpec((block_rows, _LANES), lambda i: (i, 0)),
        ),
        # Output aliases the input buffer: no second HBM allocation.
        input_output_aliases={0: 0},
        compiler_params=pltpu.CompilerParams(
            dimension_semantics=("parallel",),
            vmem_limit_bytes=32 * 1024 * 1024,
        ),
    )(slab)

    out = jnp.reshape(out_slab, (padded_total,))
    if padded_total != total:
        out = out[:total]
    return jnp.reshape(out, (n, d))


def flatten_layer(x: jax.Array) -> jax.Array:
    """Pallas equivalent of FlattenLayer.forward: x.view(N, -1)."""
    n = x.shape[0]
    d = math.prod(x.shape[1:])
    # The flatten itself is a free metadata reshape (row-major ordering is
    # identical to torch .view on a contiguous NCHW tensor).
    x2d = jnp.reshape(x, (n, d))
    # One aliased, lane-dense identity pass through the Pallas kernel.
    return _flatten_pallas(x2d)


if __name__ == "__main__":
    key = jax.random.PRNGKey(0)
    # Small NCHW input consistent with a CNN feature map: (batch=2, C=4, H=16, W=16)
    x = jax.random.normal(key, (2, 4, 16, 16), dtype=jnp.float32)

    y = flatten_layer(x)
    y = jax.block_until_ready(y)

    # Reference check against plain JAX reshape (== torch .view semantics).
    y_ref = jnp.reshape(x, (x.shape[0], -1))
    assert y.shape == (2, 4 * 16 * 16), y.shape
    assert y.dtype == x.dtype
    assert bool(jnp.array_equal(y, y_ref))

    print("KERNEL_OK")
</pallas_src>

<mosaic_0001>
module attributes {stable_mosaic.version = 11 : i64} {
  func.func @_copy_kernel(%arg0: i32, %arg1: memref<8x128xf32, #tpu.memory_space<vmem>>, %arg2: memref<8x128xf32, #tpu.memory_space<vmem>>) attributes {dimension_semantics = [#tpu.dimension_semantics<parallel>], iteration_bounds = array<i64: 2>, scalar_prefetch = 0 : i64, scratch_operands = 0 : i64, tpu.core_type = #tpu.core_type<tc>, window_params = [{transform_indices = @transform_0, window_bounds = array<i64: 8, 128>}, {transform_indices = @transform_1, window_bounds = array<i64: 8, 128>}]} {
    %c0 = arith.constant 0 : index
    %c0_0 = arith.constant 0 : index
    %0 = vector.load %arg1[%c0, %c0_0] : memref<8x128xf32, #tpu.memory_space<vmem>>, vector<8x128xf32>
    %c0_1 = arith.constant 0 : index
    %c0_2 = arith.constant 0 : index
    %1 = vector.load %arg2[%c0_1, %c0_2] : memref<8x128xf32, #tpu.memory_space<vmem>>, vector<8x128xf32>
    tpu.vector_store %arg2[%c0_1, %c0_2], %0 {strides = array<i32>} : memref<8x128xf32, #tpu.memory_space<vmem>>, vector<8x128xf32>,
    return
  }
  func.func @transform_0(%arg0: i32) -> (i32, i32) {
    %c0_i32 = arith.constant 0 : i32
    %c0_i32_0 = arith.constant 0 : i32
    return %arg0, %c0_i32 : i32, i32
  }
  func.func @transform_1(%arg0: i32) -> (i32, i32) {
    %c0_i32 = arith.constant 0 : i32
    %c0_i32_0 = arith.constant 0 : i32
    return %arg0, %c0_i32 : i32, i32
  }
}

</mosaic_0001>

<bundles_post_ra>
// kernel: _flatten_pallas.1
= control target key start
LH: loop header
LB: loop body
LE: loop exit
PB: predicated region body
PF: predicated region fallthrough
CT: control target
= control target key end

     0   :  { %s188_s6 = smov 0   ;;  %s208_s0 = inlined_call_operand.vmem [shape: f32[16,128], index: 0, kind: input, shape index: {}, may-alias: {0,1}]   ;;  %s209_s1 = inlined_call_operand.vmem [shape: f32[16,128], index: 1, kind: output, shape index: {}, may-alias: {0,1}]  }
   0x1 LB: > { %s167_s7 = sadd.s32 4294967295, %s190_s6   ;;  %p171_p0 = scmp.ge.s32.totalorder %s190_s6, 1  ;;  %s190_s6 = sphi %s188_s6, %s11_s6  }
   0x2   : > { %p86_p1 = scmp.lt.s32.totalorder %s190_s6, 3 }
   0x4   : > { %p87_p2 = pnand %p171_p0, %p86_p1 }
   0x5   : > { %p104_p3 = scmp.lt.s32.totalorder (!%p87_p2), %s167_s7, 1 }
   0x6   : > { %90 = sbr.rel (%p87_p2) target bundleno = 16 (0x10), region = 24 }
   0xb   : > { %s211_s7 = smov (!%p104_p3, %s167_s7), 1 }
   0xc   : > { %s172_s8 = sshll.u32 %s211_s7, 3 }
   0xd   : > { %s107_s11 = scalar_lea.vmem %s208_s0, %s172_s8  ;;  %s111_s14 = scalar_lea.vmem %s209_s1, %s172_s8 }
   0xe   : > { %v112_v0 = vld [vmem:[%s107_s11] sm:$0xff] }
   0xf   : > { %113 = vst [vmem:[%s111_s14] sm:$0xff] %v112_v0 }
  0x10 PF: > { %s11_s6 = sadd.s32 1, %s190_s6  }
  0x11   : > { %p8_p4 = scmp.ge.s32.totalorder %s11_s6, 4  }
  0x13   :  { %10 = sbr.rel (!%p8_p4) target bundleno = 1 (0x1), region = 54 }

</bundles_post_ra>
